<compile_context>
chip_gen: v6e
topology: v6e:2x2x1
jax: 0.10.0
libtpu: 0.0.40
codegen_flags: <defaults>
</compile_context>

<pallas_src>
import functools

import jax
import jax.numpy as jnp
from jax import lax
from jax.experimental import pallas as pl
from jax.experimental.pallas import tpu as pltpu

_LANES = 128
_SUBLANES = 8
# 8192 rows * 128 lanes * 4 B = 4 MiB f32 per block (2 MiB bf16).
_MAX_ROWS_PER_BLOCK = 8192


def _fold_rows(x, rows_per_block):
    """(TR, 128) f32 -> (8, 128) partial sum; pure VPU sublane folding."""
    return jnp.sum(
        x.reshape(rows_per_block // _SUBLANES, _SUBLANES, _LANES), axis=0)


# ----------------------------------------------------------------------------
# Kernel
# ----------------------------------------------------------------------------
def _bright_kernel(x_ref, out_ref, *, gamma, n_valid, rows_per_block,
                   need_mask):
    """One grid step: (TR, 128) tile -> (1, 8, 128) partial-sum block."""
    i = pl.program_id(0)

    # Widen on the VPU (cheap elementwise) instead of in the wrapper.
    x = x_ref[...].astype(jnp.float32)                       # (TR, 128)
    diff = jnp.abs(x - jnp.float32(gamma))

    if need_mask:
        last = pl.num_programs(0) - 1

        @pl.when(i == last)
        def _():
            # Only the last block can contain out-of-bounds rows / wrapper
            # padding, so only it pays for the iota mask (~6 extra VPU ops).
            row_g = (i * rows_per_block +
                     lax.broadcasted_iota(jnp.int32,
                                          (rows_per_block, _LANES), 0))
            full_rows = n_valid // _LANES     # static Python ints
            tail = n_valid % _LANES
            if tail == 0:
                mask = row_g < full_rows
            else:
                lane = lax.broadcasted_iota(jnp.int32,
                                            (rows_per_block, _LANES), 1)
                mask = (row_g < full_rows) | ((row_g == full_rows) &
                                              (lane < tail))
            out_ref[0] = _fold_rows(jnp.where(mask, diff, 0.0),
                                    rows_per_block)

        @pl.when(i != last)
        def _():
            out_ref[0] = _fold_rows(diff, rows_per_block)
    else:
        out_ref[0] = _fold_rows(diff, rows_per_block)


# ----------------------------------------------------------------------------
# Wrapper
# ----------------------------------------------------------------------------
def bright_loss(illum_en, gamma):
    """JAX/Pallas equivalent of BrightLoss(gamma).forward(illum_en)."""
    flat = illum_en.reshape(-1)          # free bitcast, native dtype
    n = flat.shape[0]

    # Lane-dense (rows, 128) view. The pad copy below only triggers when the
    # element count is not a multiple of 128 (rare for NCHW images) and pads
    # by < 128 elements; otherwise no padded copy is ever materialised.
    pad = (-n) % _LANES
    if pad:
        flat = jnp.pad(flat, (0, pad))
    rows = flat.shape[0] // _LANES
    x2d = flat.reshape(rows, _LANES)

    # Block sizing: multiple of 8 rows, <= 4 MiB f32 per block, and >= 2
    # blocks whenever possible so the parallel grid shards across both
    # TensorCores on v7x.
    if rows <= _SUBLANES:
        rows_per_block = _SUBLANES
    else:
        half = -(-rows // 2)
        rows_per_block = min(_MAX_ROWS_PER_BLOCK,
                             -(-half // _SUBLANES) * _SUBLANES)
    num_blocks = -(-rows // rows_per_block)
    # Mask is only needed if the grid over-covers the valid element range.
    need_mask = (num_blocks * rows_per_block * _LANES) != n

    kernel = functools.partial(
        _bright_kernel,
        gamma=float(gamma),
        n_valid=n,
        rows_per_block=rows_per_block,
        need_mask=need_mask,
    )

    partials = pl.pallas_call(
        kernel,
        out_shape=jax.ShapeDtypeStruct((num_blocks, _SUBLANES, _LANES),
                                       jnp.float32),
        grid_spec=pltpu.PrefetchScalarGridSpec(
            num_scalar_prefetch=0,
            grid=(num_blocks,),
            in_specs=[pl.BlockSpec((rows_per_block, _LANES),
                                   lambda i: (i, 0))],
            out_specs=pl.BlockSpec((1, _SUBLANES, _LANES),
                                   lambda i: (i, 0, 0)),
        ),
        compiler_params=pltpu.CompilerParams(
            dimension_semantics=("parallel",)),
    )(x2d)

    # Tiny final reduction + mean normalisation in the wrapper.
    return jnp.sum(partials) / jnp.float32(n)


# ----------------------------------------------------------------------------
# Pure-JAX reference
# ----------------------------------------------------------------------------
def bright_loss_ref(illum_en, gamma):
    return jnp.mean(jnp.abs(illum_en.astype(jnp.float32) - jnp.float32(gamma)))


# ----------------------------------------------------------------------------
if __name__ == "__main__":
    key = jax.random.PRNGKey(0)
    gamma = 0.6

    # Main case: (2, 4, 16, 16) f32 — evenly divisible, zero masking overhead.
    N, C, H, W = 2, 4, 16, 16
    illum_en = jax.random.uniform(key, (N, C, H, W), dtype=jnp.float32)
    out = jax.block_until_ready(bright_loss(illum_en, gamma))
    ref = bright_loss_ref(illum_en, gamma)
    assert jnp.allclose(out, ref, rtol=1e-5, atol=1e-6), (out, ref)

    # bf16 path (native-dtype DMA, in-kernel widening).
    illum_bf16 = illum_en.astype(jnp.bfloat16)
    out_bf = jax.block_until_ready(bright_loss(illum_bf16, gamma))
    ref_bf = bright_loss_ref(illum_bf16, gamma)
    assert jnp.allclose(out_bf, ref_bf, rtol=2e-2, atol=2e-3), (out_bf, ref_bf)

    # Ragged case: exercises the partial last block + last-block-only mask.
    key2 = jax.random.PRNGKey(0)
    ragged = jax.random.uniform(key2, (3, 5, 7, 11), dtype=jnp.float32)
    out_r = jax.block_until_ready(bright_loss(ragged, gamma))
    ref_r = bright_loss_ref(ragged, gamma)
    assert jnp.allclose(out_r, ref_r, rtol=1e-5, atol=1e-6), (out_r, ref_r)

    print("KERNEL_OK")
</pallas_src>

<mosaic_0001>
module attributes {stable_mosaic.version = 11 : i64} {
  func.func @_bright_kernel(%arg0: i32, %arg1: memref<8x128xf32, #tpu.memory_space<vmem>>, %arg2: memref<1x8x128xf32, #tpu.memory_space<vmem>>) attributes {dimension_semantics = [#tpu.dimension_semantics<parallel>], iteration_bounds = array<i64: 2>, scalar_prefetch = 0 : i64, scratch_operands = 0 : i64, tpu.core_type = #tpu.core_type<tc>, window_params = [{transform_indices = @transform_0, window_bounds = array<i64: 8, 128>}, {transform_indices = @transform_1, window_bounds = array<i64: 1, 8, 128>}]} {
    %c0 = arith.constant 0 : index
    %c0_0 = arith.constant 0 : index
    %0 = vector.load %arg1[%c0, %c0_0] : memref<8x128xf32, #tpu.memory_space<vmem>>, vector<8x128xf32>
    %cst = arith.constant 6.000000e-01 : f32
    %1 = vector.broadcast %cst : f32 to vector<8x128xf32>
    %2 = arith.subf %0, %1 : vector<8x128xf32>
    %3 = math.absf %2 : vector<8x128xf32>
    %4 = vector.shape_cast %3 : vector<8x128xf32> to vector<1x8x128xf32>
    %cst_1 = arith.constant dense<0.000000e+00> : vector<8x128xf32>
    %5 = vector.multi_reduction <add>, %4, %cst_1 [0] : vector<1x8x128xf32> to vector<8x128xf32>
    %c0_2 = arith.constant 0 : index
    %c0_3 = arith.constant 0 : index
    %c0_4 = arith.constant 0 : index
    %6 = vector.load %arg2[%c0_2, %c0_3, %c0_4] : memref<1x8x128xf32, #tpu.memory_space<vmem>>, vector<1x8x128xf32>
    %7 = vector.shape_cast %6 : vector<1x8x128xf32> to vector<8x128xf32>
    %8 = vector.shape_cast %5 : vector<8x128xf32> to vector<1x8x128xf32>
    tpu.vector_store %arg2[%c0_2, %c0_3, %c0_4], %8 {strides = array<i32>} : memref<1x8x128xf32, #tpu.memory_space<vmem>>, vector<1x8x128xf32>,
    return
  }
  func.func @transform_0(%arg0: i32) -> (i32, i32) {
    %c0_i32 = arith.constant 0 : i32
    %c0_i32_0 = arith.constant 0 : i32
    return %arg0, %c0_i32 : i32, i32
  }
  func.func @transform_1(%arg0: i32) -> (i32, i32, i32) {
    %c0_i32 = arith.constant 0 : i32
    %c0_i32_0 = arith.constant 0 : i32
    %c0_i32_1 = arith.constant 0 : i32
    return %arg0, %c0_i32, %c0_i32_0 : i32, i32, i32
  }
}

</mosaic_0001>

<bundles_post_ra>
// kernel: tpu_custom_call.1
= control target key start
LH: loop header
LB: loop body
LE: loop exit
PB: predicated region body
PF: predicated region fallthrough
CT: control target
= control target key end

     0   :  { %6 = vsyncpa [#allocation3], 0  ;;  %s527_s0 = inlined_call_operand.hbm [shape: f32[16,128], index: 0, kind: input, shape index: {}]   ;;  %s528_s1 = inlined_call_operand.hbm [shape: f32[2,8,128], index: 1, kind: output, shape index: {}]  }
   0x1   :  { %8 = vsyncpa [#allocation3 + $0x1], 0 }
   0x2   :  { %9 = vsyncpa [#allocation4], 0 }
   0x3   :  { %11 = vsyncpa [#allocation4 + $0x1], 0  ;;  %s386_s6 = smov 0   ;;  %s388_s7 = smov 0  }
   0x4   :  { %s390_s8 = smov 0   ;;  %s392_s9 = smov 0  }
   0x5 LB: > { %s407_s10 = sadd.s32 4294967295, %s372_s9   ;;  %s221_s11 = sadd.s32 4294967294, %s372_s9   ;;  %s372_s9 = sphi %s392_s9, %s545_s9   ;;  %s368_s8 = sphi %s390_s8, %s544_s8   ;;  %s364_s7 = sphi %s388_s7, %s543_s7   ;;  %s360_s6 = sphi %s386_s6, %s542_s6  }
   0x6   : > { %s411_s12 = sadd.s32 1, %s372_s9   ;;  %s24_s13 = sadd.s32 1, %s368_s8 }
   0x7   : > { %s21_s14 = ssub.s32 %s372_s9, %s411_s12  ;;  %p31_p0 = scmp.ne.s32.totalorder %s368_s8, %s364_s7 }
   0x8   : > { %p22_p1 = scmp.eq.s32.totalorder %s21_s14, 0  ;;  %p32_p2 = scmp.eq.s32.totalorder %s372_s9, 0 }
   0x9   : > { %p37_p3 = scmp.ne.s32.totalorder %s364_s7, %s360_s6  ;;  %p38_p4 = scmp.eq.s32.totalorder %s407_s10, 0 }
   0xa   : > { %s423_s15 = scalar_select %p22_p1, %s368_s8, %s24_s13  }
   0xb   : > { %p425_p5 = por %p32_p2, %p31_p0  ;;  %p429_p6 = por %p38_p4, %p37_p3 }
   0xc   : > { %p61_p7 = scmp.eq.s32.totalorder %s407_s10, 1  ;;  %p67_p8 = scmp.eq.s32.totalorder %s221_s11, 1 }
   0xd   : > { %s532_s17 = scalar_select %p429_p6, 1, 0 }
   0xe   : > { %p246_p10 = scmp.lt.s32.totalorder %s372_s9, 2  ;;  %p436_p11 = por %p61_p7, %p31_p0 }
   0xf   : > { %p440_p12 = por %p67_p8, %p37_p3  ;;  %s87_s20 = sand.u32 1, %s368_s8  }
  0x10   : > { %s533_s18 = scalar_select %p436_p11, 1, 0 }
  0x11   : > { %s534_s19 = scalar_select %p440_p12, 1, 0 }
  0x12   : > { %s225_s21 = sshll.u32 %s372_s9, 7  ;;  %s224_s22 = sshll.u32 %s87_s20, 3 }
  0x13   : > { %s449_s25 = scalar_lea.hbm %s527_s0, %s225_s21  ;;  %s91_s26 = scalar_lea.vmem [#allocation2], %s224_s22 }
  0x14   : > { %s98_s27 = sshll.u32 %s91_s26, 4  ;;  %p453_p13 = pnand %p246_p10, %p425_p5  ;;  %s457_s27 = int_to_ptr.vmem [resolvable:$true] %s98_s27 }
  0x15   : > { %s88_s29 = scalar_lea.sflag [#allocation3], %s87_s20  ;;  %s280_s30 = scalar_lea.hbm %s449_s25, 128 }
  0x16   : > { %p281_p2 = scmp.ne.s32.totalorder %s449_s25, %s280_s30  ;;  %p282_p3 = pneg %p453_p13 }
  0x17   : > { %s285_s4 = scalar_lea.hbm %s527_s0, 256  ;;  %p286_p5 = scmp.lt.s32.totalorder %s449_s25, %s527_s0 }
  0x18   : > { %p283_p4 = pnand %p282_p3, %p281_p2  ;;  %p287_p8 = scmp.lt.s32.totalorder %s285_s4, %s280_s30 }
  0x1a   : > { %p284_p7 = pneg %p283_p4  ;;  %p288_p10 = por %p287_p8, %p286_p5 }
  0x1c   : > { %p289_p9 = pnand %p288_p10, %p284_p7 }
  0x1e   : > { %292 = shalt.err (!%p289_p9)
}
  0x1f   : > { %s293_s13 = scalar_lea.vmem %s457_s27, 128  ;;  %s374_s14 = smov [#allocation2]  }
  0x20   : > { %p294_p0 = scmp.ne.s32.totalorder %s457_s27, %s293_s13  ;;  %s298_s16 = sshll.u32 %s374_s14, 4  ;;  %s299_s16 = int_to_ptr.vmem [resolvable:$false] %s298_s16 }
  0x21   : > { %s300_s20 = scalar_lea.vmem %s299_s16, 256  ;;  %p301_p4 = scmp.lt.s32.totalorder %s457_s27, %s299_s16 }
  0x22   : > { %p296_p1 = pnand %p294_p0, %p282_p3  ;;  %p302_p12 = scmp.lt.s32.totalorder %s300_s20, %s293_s13 }
  0x24   : > { %p297_p2 = pneg %p296_p1  ;;  %p303_p11 = por %p302_p12, %p301_p4 }
  0x26   : > { %p304_p6 = pnand %p303_p11, %p297_p2 }
  0x28   : > { %307 = shalt.err (!%p304_p6)
}
  0x29   : > { %241 = dma.hbm_to_vmem [thread:$0]  (!%p453_p13), %s449_s25, 128, %s457_s27, %s88_s29  }
  0x2a   : > { %p536_p9 = scmp.lt.s32.totalorder %s372_s9, 3  ;;  %p537_p7 = scmp.ge.s32.totalorder %s372_s9, 1 }
  0x2c   : > { %p104_p0 = pnand %p537_p7, %p536_p9 }
  0x2d   : > { %s484_s21 = sand.u32 (!%p104_p0), 1, %s364_s7   ;;  %p538_p6 = scmp.ne.s32.totalorder (!%p104_p0), %s532_s17, 0 }
  0x2e   : > { %107 = sbr.rel (%p104_p0) target bundleno = 77 (0x4d), region = 24  ;;  %s227_s22 = sshll.u32 (!%p104_p0), %s484_s21, 3 }
  0x2f   : > { %s110_s23 = scalar_lea.sflag (!%p104_p0), [#allocation3], %s484_s21  ;;  %s113_s24 = scalar_lea.vmem (!%p104_p0), [#allocation2], %s227_s22 }
  0x33   : > { %351 = dma.done.wait (%p538_p6), %s110_s23, 128  }
  0x34   : > { %353 = vsyncadd (%p538_p6), %s110_s23, 4294967168  ;;  %v132_v0 = vld [vmem:[%s113_s24] sm:$0xff]  ;;  %s131_s25 = scalar_lea.vmem [#allocation5], %s227_s22  ;;  %s231_s27 = sshll.u32 %s407_s10, 7 }
  0x35   : > { %s151_s26 = sshll.u32 %s131_s25, 4  ;;  %v229_v1 = vadd.f32 -0.6, %v132_v0  ;;  %s149_s30 = scalar_lea.hbm %s528_s1, %s231_s27  ;;  %s152_s26 = int_to_ptr.vmem [resolvable:$true] %s151_s26 }
  0x36   : > { %s138_s2 = scalar_lea.sflag [#allocation4], %s484_s21  ;;  %s308_s3 = scalar_lea.vmem %s152_s26, 128 }
  0x37   : > { %v134_v2 = vand.u32 2147483647, %v229_v1  ;;  %p309_p11 = scmp.ne.s32.totalorder %s152_s26, %s308_s3  ;;  %p539_p12 = scmp.ne.s32.totalorder %s533_s18, 0 }
  0x38   : > { %s375_s17 = smov [#allocation5]  }
  0x39   : > { %136 = vst [vmem:[%s131_s25] sm:$0xff] %v134_v2  ;;  %p310_p13 = pnand %p309_p11, %p539_p12  ;;  %s312_s4 = sshll.u32 %s375_s17, 4  ;;  %s313_s4 = int_to_ptr.vmem [resolvable:$false] %s312_s4 }
  0x3a   : > { %s314_s5 = scalar_lea.vmem %s313_s4, 256  ;;  %p315_p3 = scmp.lt.s32.totalorder %s152_s26, %s313_s4 }
  0x3b   : > { %p311_p1 = pneg %p310_p13  ;;  %p316_p5 = scmp.lt.s32.totalorder %s314_s5, %s308_s3 }
  0x3d   : > { %p317_p8 = por %p316_p5, %p315_p3 }
  0x3f   : > { %p318_p10 = pnand %p317_p8, %p311_p1 }
  0x41   : > { %321 = shalt.err (!%p318_p10)
}
  0x42   : > { %s322_s10 = scalar_lea.hbm %s149_s30, 128  ;;  %s326_s14 = scalar_lea.hbm %s528_s1, 256 }
  0x43   : > { %p323_p2 = scmp.ne.s32.totalorder %s149_s30, %s322_s10  ;;  %p327_p7 = scmp.lt.s32.totalorder %s149_s30, %s528_s1 }
  0x44   : > { %p328_p0 = scmp.lt.s32.totalorder %s326_s14, %s322_s10 }
  0x45   : > { %p324_p4 = pnand %p323_p2, %p539_p12 }
  0x46   : > { %p329_p6 = por %p328_p0, %p327_p7 }
  0x47   : > { %p325_p9 = pneg %p324_p4 }
  0x49   : > { %p330_p11 = pnand %p329_p6, %p325_p9 }
  0x4b   : > { %333 = shalt.err (!%p330_p11)
}
  0x4c   : > { %236 = dma.vmem_to_hbm [thread:$0]  (%p539_p12), %s152_s26, 128, %s149_s30, %s138_s2  }
  0x4d PF: > { %s163_s21 = sand.u32 1, %s360_s6   ;;  %p540_p13 = scmp.ne.s32.totalorder %s534_s19, 0 }
  0x4e   : > { %p541_p1 = scmp.ge.s32.totalorder %s372_s9, 2  ;;  %s164_s22 = scalar_lea.sflag [#allocation4], %s163_s21 }
  0x50   : > { %p243_p3 = pnand %p541_p1, %p540_p13 }
  0x52   : > { %p244_p5 = pneg %p243_p3 }
  0x54   : > { %355 = dma.done.wait (%p244_p5), %s164_s22, 128  }
  0x55   : > { %357 = vsyncadd (%p244_p5), %s164_s22, 4294967168  ;;  %p14_p8 = scmp.ge.s32.totalorder %s411_s12, 4   ;;  %s542_s6 = smov %s364_s7 }
  0x56   : > { %s543_s7 = smov %s368_s8  ;;  %s544_s8 = smov %s423_s15 }
  0x57   : > { %s545_s9 = smov %s411_s12  ;;  %16 = sbr.rel (!%p14_p8) target bundleno = 5 (0x5), region = 69 }
  0x5c   :  { %169 = vsyncpa [#allocation3], 1 }
  0x5d   :  { %171 = vsyncpa [#allocation3 + $0x1], 1 }
  0x5e   :  { %172 = vsyncpa [#allocation4], 1 }
  0x5f   :  { %174 = vsyncpa [#allocation4 + $0x1], 1 }

</bundles_post_ra>
